<compile_context>
chip_gen: v7x
topology: tpu7x:2x2x1
jax: 0.10.0
libtpu: 0.0.40
codegen_flags: <defaults>
</compile_context>

<pallas_src>
import functools

import jax
import jax.numpy as jnp
from jax.experimental import pallas as pl
from jax.experimental.pallas import tpu as pltpu

DT = 0.001
V_TH = 1.0


def _round_up(x, m):
    return (x + m - 1) // m * m


def snn_kernel(cur_ref,                 # (Tc, Bp, Hp) precomputed fc_input currents (chunk)
               w_ih_ref,                # (Hp, Hp)  l1 input weights (transposed, zero-padded)
               w_hh_ref,                # (Hp, Hp)  l1 recurrent weights (transposed, zero-padded)
               w_out_ref,               # (Hp, Op)  fc_output weights (transposed, zero-padded)
               decay_h_ref,             # (4, Hp)   rows: dt*ts_enc, dt*tm_enc, dt*ts_l1, dt*tm_l1
               decay_o_ref,             # (2, Op)   rows: dt*ts_out, dt*tm_out
               volt_ref,                # out (Tc, Bp, Op)       voltages for this chunk
               state_h_ref,             # out (5, Bp, Hp)        senc_v, senc_i, s1_z, s1_v, s1_i
               state_o_ref,             # out (2, Bp, Op)        so_v, so_i
               *, t_total, t_chunk):
    c = pl.program_id(0)

    @pl.when(c == 0)
    def _():
        state_h_ref[...] = jnp.zeros_like(state_h_ref)
        state_o_ref[...] = jnp.zeros_like(state_o_ref)

    Bp = state_h_ref.shape[1]
    Hp = state_h_ref.shape[2]
    Op = state_o_ref.shape[2]

    # Hoist decay broadcasts out of the recurrent loop (values are DT * clip(tau, 0, 1)).
    dt_ts_enc = jnp.broadcast_to(decay_h_ref[0:1, :], (Bp, Hp))
    dt_tm_enc = jnp.broadcast_to(decay_h_ref[1:2, :], (Bp, Hp))
    dt_ts_l1 = jnp.broadcast_to(decay_h_ref[2:3, :], (Bp, Hp))
    dt_tm_l1 = jnp.broadcast_to(decay_h_ref[3:4, :], (Bp, Hp))
    dt_ts_out = jnp.broadcast_to(decay_o_ref[0:1, :], (Bp, Op))
    dt_tm_out = jnp.broadcast_to(decay_o_ref[1:2, :], (Bp, Op))

    masked_tail = (t_total % t_chunk) != 0   # static Python bool

    def step(t, carry):
        senc_v, senc_i, s1_z, s1_v, s1_i, so_v, so_i = carry
        cur = cur_ref[t]                                            # (Bp, Hp)

        # ---- encode: LIF feed-forward cell ----
        v_dec = senc_v + dt_tm_enc * (senc_i - senc_v)
        i_dec = senc_i - dt_ts_enc * senc_i
        z_enc = (v_dec - V_TH > 0).astype(jnp.float32)
        senc_v_n = (1.0 - z_enc) * v_dec
        senc_i_n = i_dec + cur

        # ---- l1: recurrent LIF cell (autapses=True) ----
        v1_dec = s1_v + dt_tm_l1 * (s1_i - s1_v)
        i1_dec = s1_i - dt_ts_l1 * s1_i
        z1 = (v1_dec - V_TH > 0).astype(jnp.float32)
        s1_v_n = (1.0 - z1) * v1_dec
        s1_i_n = (i1_dec
                  + jnp.dot(z_enc, w_ih_ref[...], preferred_element_type=jnp.float32)
                  + jnp.dot(s1_z, w_hh_ref[...], preferred_element_type=jnp.float32))

        # ---- fc_output + LI readout cell ----
        out_cur = jnp.dot(z1, w_out_ref[...], preferred_element_type=jnp.float32)  # (Bp, Op)
        i_jump = so_i + out_cur
        so_v_n = so_v + dt_tm_out * (i_jump - so_v)
        so_i_n = i_jump - dt_ts_out * i_jump

        volt_ref[t] = so_v_n   # lane-dense store into the chunk's VMEM slab

        new = (senc_v_n, senc_i_n, z1, s1_v_n, s1_i_n, so_v_n, so_i_n)
        if masked_tail:
            # Only advance state for real (unpadded) timesteps in the final chunk.
            m = ((c * t_chunk + t) < t_total).astype(jnp.float32)
            new = tuple(m * n + (1.0 - m) * o for n, o in zip(new, carry))
        return new

    carry = (state_h_ref[0], state_h_ref[1], state_h_ref[2],
             state_h_ref[3], state_h_ref[4],
             state_o_ref[0], state_o_ref[1])
    carry = jax.lax.fori_loop(0, t_chunk, step, carry)
    senc_v, senc_i, s1_z, s1_v, s1_i, so_v, so_i = carry

    state_h_ref[0] = senc_v
    state_h_ref[1] = senc_i
    state_h_ref[2] = s1_z
    state_h_ref[3] = s1_v
    state_h_ref[4] = s1_i
    state_o_ref[0] = so_v
    state_o_ref[1] = so_i


def snn_forward(x, params, *, t_chunk=None):
    """x: (batch, seq, input_features). Returns (voltages[T,B,O], [s1, z_rec, senc, so])."""
    x = x.astype(jnp.float32)
    B, T, I = x.shape
    H = params["w_in"].shape[1]
    O = params["w_out"].shape[1]

    Bp = _round_up(B, 8)
    Hp = _round_up(H, 128)
    Op = _round_up(O, 128)

    if t_chunk is None:
        t_chunk = 128
    Tc = max(1, min(t_chunk, T))
    n_chunks = pl.cdiv(T, Tc)
    T_pad = n_chunks * Tc

    hp = jax.lax.Precision.HIGHEST
    # fc_input (no bias) hoisted out of the recurrence: one MXU-efficient matmul.
    cur = jnp.einsum("bti,ih->tbh", x, params["w_in"].astype(jnp.float32),
                     precision=hp)                                     # (T, B, H) time-major
    cur = jnp.pad(cur, ((0, T_pad - T), (0, Bp - B), (0, Hp - H)))     # zero pad => no spurious spikes

    w_ih = jnp.pad(params["w_ih"].astype(jnp.float32), ((0, Hp - H), (0, Hp - H)))
    w_hh = jnp.pad(params["w_hh"].astype(jnp.float32), ((0, Hp - H), (0, Hp - H)))
    w_out = jnp.pad(params["w_out"].astype(jnp.float32), ((0, Hp - H), (0, Op - O)))

    # Pre-clip taus and fold in DT once (hoisted out of the T-step serial loop).
    ts_enc = jnp.clip(params["tau_syn_enc"].astype(jnp.float32).reshape(-1), 0.0, 1.0)
    tm_enc = jnp.clip(params["tau_mem_enc"].astype(jnp.float32).reshape(-1), 0.0, 1.0)
    ts_l1 = jnp.clip(params["tau_syn_l1"].astype(jnp.float32).reshape(-1), 0.0, 1.0)
    tm_l1 = jnp.clip(params["tau_mem_l1"].astype(jnp.float32).reshape(-1), 0.0, 1.0)
    decay_h = DT * jnp.stack([ts_enc, tm_enc, ts_l1, tm_l1])           # (4, H)
    decay_h = jnp.pad(decay_h, ((0, 0), (0, Hp - H)))
    tso = jnp.clip(params["tau_syn_out"].astype(jnp.float32), 0.0, 1.0)
    tmo = jnp.clip(params["tau_mem_out"].astype(jnp.float32), 0.0, 1.0)
    decay_o = DT * jnp.stack([jnp.broadcast_to(tso, (Op,)),
                              jnp.broadcast_to(tmo, (Op,))])           # (2, Op)

    grid_spec = pltpu.PrefetchScalarGridSpec(
        num_scalar_prefetch=0,
        grid=(n_chunks,),
        in_specs=[
            pl.BlockSpec((Tc, Bp, Hp), lambda c: (c, 0, 0)),   # cur (per time chunk)
            pl.BlockSpec((Hp, Hp), lambda c: (0, 0)),          # w_ih
            pl.BlockSpec((Hp, Hp), lambda c: (0, 0)),          # w_hh
            pl.BlockSpec((Hp, Op), lambda c: (0, 0)),          # w_out
            pl.BlockSpec((4, Hp), lambda c: (0, 0)),           # decay_h
            pl.BlockSpec((2, Op), lambda c: (0, 0)),           # decay_o
        ],
        out_specs=[
            pl.BlockSpec((Tc, Bp, Op), lambda c: (c, 0, 0)),   # voltages (per time chunk)
            pl.BlockSpec((5, Bp, Hp), lambda c: (0, 0, 0)),    # hidden LIF states (resident)
            pl.BlockSpec((2, Bp, Op), lambda c: (0, 0, 0)),    # LI readout state (resident)
        ],
    )
    out_shapes = (
        jax.ShapeDtypeStruct((T_pad, Bp, Op), jnp.float32),
        jax.ShapeDtypeStruct((5, Bp, Hp), jnp.float32),
        jax.ShapeDtypeStruct((2, Bp, Op), jnp.float32),
    )

    # Rough VMEM budget (double-buffered chunk I/O + weights + states), with headroom,
    # capped below v7x's 64 MiB physical VMEM.
    f32b = 4
    vmem_est = f32b * (2 * Tc * Bp * (Hp + Op)
                       + 2 * (2 * Hp * Hp + Hp * Op + 4 * Hp + 2 * Op)
                       + 2 * (5 * Bp * Hp + 2 * Bp * Op))
    vmem_limit = int(min(64 * 1024 * 1024, max(16 * 1024 * 1024, 2 * vmem_est)))

    kernel = functools.partial(snn_kernel, t_total=T, t_chunk=Tc)
    volt_p, state_h, state_o = pl.pallas_call(
        kernel,
        out_shape=out_shapes,
        grid_spec=grid_spec,
        compiler_params=pltpu.CompilerParams(
            dimension_semantics=("arbitrary",),
            vmem_limit_bytes=vmem_limit),
    )(cur, w_ih, w_hh, w_out, decay_h, decay_o)

    voltages = volt_p[:T, :B, :O]
    senc = (state_h[0, :B, :H], state_h[1, :B, :H])
    s1 = (state_h[2, :B, :H], state_h[3, :B, :H], state_h[4, :B, :H])   # (z, v, i)
    z_rec = state_h[2, :B, :H]                                          # with_delay=False => == s1.z
    so = (state_o[0, :B, :O], state_o[1, :B, :O])
    return voltages, [s1, z_rec, senc, so]


def make_params(key, input_features, hidden_features, output_features,
                tau_syn=0.1, tau_mem=0.05, tau_syn_out=0.5, tau_mem_out=0.5):
    """Deterministic synthetic parameters; Linear-style uniform(-1/sqrt(fan_in), +) init."""
    k1, k2, k3, k4 = jax.random.split(key, 4)

    def lin(k, fan_in, fan_out):
        bound = 1.0 / jnp.sqrt(fan_in)
        # stored transposed (in_features, out_features) so kernel does x @ W
        return jax.random.uniform(k, (fan_in, fan_out), jnp.float32, -bound, bound)

    return {
        "w_in": lin(k1, input_features, hidden_features),
        "w_ih": lin(k2, hidden_features, hidden_features),
        "w_hh": lin(k3, hidden_features, hidden_features),
        "w_out": lin(k4, hidden_features, output_features),
        "tau_syn_enc": jnp.full((1, hidden_features), tau_syn, jnp.float32),
        "tau_mem_enc": jnp.full((1, hidden_features), tau_mem, jnp.float32),
        "tau_syn_l1": jnp.full((1, hidden_features), tau_syn, jnp.float32),
        "tau_mem_l1": jnp.full((1, hidden_features), tau_mem, jnp.float32),
        "tau_syn_out": jnp.asarray(tau_syn_out, jnp.float32),
        "tau_mem_out": jnp.asarray(tau_mem_out, jnp.float32),
    }


def snn_ref(x, p):
    """Pure-JAX reference of the same forward (for correctness check)."""
    B, T, I = x.shape
    H = p["w_in"].shape[1]
    O = p["w_out"].shape[1]
    hp = jax.lax.Precision.HIGHEST
    senc_v = jnp.zeros((B, H)); senc_i = jnp.zeros((B, H))
    s1_z = jnp.zeros((B, H)); s1_v = jnp.zeros((B, H)); s1_i = jnp.zeros((B, H))
    so_v = jnp.zeros((B, O)); so_i = jnp.zeros((B, O))
    ts_enc = jnp.clip(p["tau_syn_enc"], 0, 1); tm_enc = jnp.clip(p["tau_mem_enc"], 0, 1)
    ts_l1 = jnp.clip(p["tau_syn_l1"], 0, 1); tm_l1 = jnp.clip(p["tau_mem_l1"], 0, 1)
    tso = jnp.clip(p["tau_syn_out"], 0, 1); tmo = jnp.clip(p["tau_mem_out"], 0, 1)
    volts = []
    for t in range(T):
        cur = jnp.dot(x[:, t, :], p["w_in"], precision=hp)
        v_dec = senc_v + DT * tm_enc * (-senc_v + senc_i)
        i_dec = senc_i - DT * ts_enc * senc_i
        z_enc = (v_dec - V_TH > 0).astype(jnp.float32)
        senc_v = (1 - z_enc) * v_dec
        senc_i = i_dec + cur
        v1d = s1_v + DT * tm_l1 * (-s1_v + s1_i)
        i1d = s1_i - DT * ts_l1 * s1_i
        z1 = (v1d - V_TH > 0).astype(jnp.float32)
        new_i = i1d + jnp.dot(z_enc, p["w_ih"], precision=hp) + jnp.dot(s1_z, p["w_hh"], precision=hp)
        s1_v = (1 - z1) * v1d
        s1_i = new_i
        s1_z = z1
        oc = jnp.dot(z1, p["w_out"], precision=hp)
        ij = so_i + oc
        so_v = so_v + DT * tmo * (-so_v + ij)
        so_i = ij - DT * tso * ij
        volts.append(so_v)
    return jnp.stack(volts)


if __name__ == "__main__":
    B, T, I, H, O = 2, 8, 16, 32, 4
    key = jax.random.PRNGKey(0)
    kx, kp = jax.random.split(key)
    x = jax.random.normal(kx, (B, T, I), jnp.float32)
    params = make_params(kp, I, H, O)

    voltages, (s1, z_rec, senc, so) = snn_forward(x, params)
    voltages = jax.block_until_ready(voltages)

    ref = snn_ref(x, params)
    assert voltages.shape == (T, B, O), voltages.shape
    assert s1[0].shape == (B, H) and z_rec.shape == (B, H) and so[0].shape == (B, O)
    assert jnp.allclose(voltages, ref, rtol=1e-4, atol=1e-5), "mismatch vs reference"
    print("KERNEL_OK")
</pallas_src>

<mosaic_0001>
module attributes {stable_mosaic.version = 11 : i64} {
  func.func @snn_kernel(%arg0: i32, %arg1: memref<8x8x128xf32, #tpu.memory_space<vmem>>, %arg2: memref<128x128xf32, #tpu.memory_space<vmem>>, %arg3: memref<128x128xf32, #tpu.memory_space<vmem>>, %arg4: memref<128x128xf32, #tpu.memory_space<vmem>>, %arg5: memref<4x128xf32, #tpu.memory_space<vmem>>, %arg6: memref<2x128xf32, #tpu.memory_space<vmem>>, %arg7: memref<8x8x128xf32, #tpu.memory_space<vmem>>, %arg8: memref<5x8x128xf32, #tpu.memory_space<vmem>>, %arg9: memref<2x8x128xf32, #tpu.memory_space<vmem>>) attributes {dimension_semantics = [#tpu.dimension_semantics<arbitrary>], iteration_bounds = array<i64: 1>, scalar_prefetch = 0 : i64, scratch_operands = 0 : i64, tpu.core_type = #tpu.core_type<tc>, window_params = [{transform_indices = @transform_0, window_bounds = array<i64: 8, 8, 128>}, {pipeline_mode = #tpu.pipeline_mode<synchronous>, transform_indices = @transform_1, window_bounds = array<i64: 128, 128>}, {pipeline_mode = #tpu.pipeline_mode<synchronous>, transform_indices = @transform_2, window_bounds = array<i64: 128, 128>}, {pipeline_mode = #tpu.pipeline_mode<synchronous>, transform_indices = @transform_3, window_bounds = array<i64: 128, 128>}, {pipeline_mode = #tpu.pipeline_mode<synchronous>, transform_indices = @transform_4, window_bounds = array<i64: 4, 128>}, {pipeline_mode = #tpu.pipeline_mode<synchronous>, transform_indices = @transform_5, window_bounds = array<i64: 2, 128>}, {transform_indices = @transform_6, window_bounds = array<i64: 8, 8, 128>}, {pipeline_mode = #tpu.pipeline_mode<synchronous>, transform_indices = @transform_7, window_bounds = array<i64: 5, 8, 128>}, {pipeline_mode = #tpu.pipeline_mode<synchronous>, transform_indices = @transform_8, window_bounds = array<i64: 2, 8, 128>}]} {
    %c0_i32 = arith.constant 0 : i32
    %0 = arith.cmpi eq, %arg0, %c0_i32 : i32
    %1 = arith.extui %0 : i1 to i32
    %c0_i32_0 = arith.constant 0 : i32
    %2 = arith.cmpi ne, %1, %c0_i32_0 : i32
    scf.if %2 {
      %cst = arith.constant 0.000000e+00 : f32
      %58 = vector.broadcast %cst : f32 to vector<5x8x128xf32>
      %c0_52 = arith.constant 0 : index
      %c0_53 = arith.constant 0 : index
      %c0_54 = arith.constant 0 : index
      %59 = vector.load %arg8[%c0_52, %c0_53, %c0_54] : memref<5x8x128xf32, #tpu.memory_space<vmem>>, vector<5x8x128xf32>
      tpu.vector_store %arg8[%c0_52, %c0_53, %c0_54], %58 {strides = array<i32>} : memref<5x8x128xf32, #tpu.memory_space<vmem>>, vector<5x8x128xf32>,
      %cst_55 = arith.constant 0.000000e+00 : f32
      %60 = vector.broadcast %cst_55 : f32 to vector<2x8x128xf32>
      %c0_56 = arith.constant 0 : index
      %c0_57 = arith.constant 0 : index
      %c0_58 = arith.constant 0 : index
      %61 = vector.load %arg9[%c0_56, %c0_57, %c0_58] : memref<2x8x128xf32, #tpu.memory_space<vmem>>, vector<2x8x128xf32>
      tpu.vector_store %arg9[%c0_56, %c0_57, %c0_58], %60 {strides = array<i32>} : memref<2x8x128xf32, #tpu.memory_space<vmem>>, vector<2x8x128xf32>,
    } else {
    }
    %c0 = arith.constant 0 : index
    %c0_1 = arith.constant 0 : index
    %3 = vector.load %arg5[%c0, %c0_1] : memref<4x128xf32, #tpu.memory_space<vmem>>, vector<1x128xf32>
    %4 = vector.shape_cast %3 : vector<1x128xf32> to vector<1x128xf32>
    %5 = vector.broadcast %4 : vector<1x128xf32> to vector<8x128xf32>
    %c1 = arith.constant 1 : index
    %c0_2 = arith.constant 0 : index
    %6 = vector.load %arg5[%c1, %c0_2] : memref<4x128xf32, #tpu.memory_space<vmem>>, vector<1x128xf32>
    %7 = vector.shape_cast %6 : vector<1x128xf32> to vector<1x128xf32>
    %8 = vector.broadcast %7 : vector<1x128xf32> to vector<8x128xf32>
    %c2 = arith.constant 2 : index
    %c0_3 = arith.constant 0 : index
    %9 = vector.load %arg5[%c2, %c0_3] : memref<4x128xf32, #tpu.memory_space<vmem>>, vector<1x128xf32>
    %10 = vector.shape_cast %9 : vector<1x128xf32> to vector<1x128xf32>
    %11 = vector.broadcast %10 : vector<1x128xf32> to vector<8x128xf32>
    %c3 = arith.constant 3 : index
    %c0_4 = arith.constant 0 : index
    %12 = vector.load %arg5[%c3, %c0_4] : memref<4x128xf32, #tpu.memory_space<vmem>>, vector<1x128xf32>
    %13 = vector.shape_cast %12 : vector<1x128xf32> to vector<1x128xf32>
    %14 = vector.broadcast %13 : vector<1x128xf32> to vector<8x128xf32>
    %c0_5 = arith.constant 0 : index
    %c0_6 = arith.constant 0 : index
    %15 = vector.load %arg6[%c0_5, %c0_6] : memref<2x128xf32, #tpu.memory_space<vmem>>, vector<1x128xf32>
    %16 = vector.shape_cast %15 : vector<1x128xf32> to vector<1x128xf32>
    %17 = vector.broadcast %16 : vector<1x128xf32> to vector<8x128xf32>
    %c1_7 = arith.constant 1 : index
    %c0_8 = arith.constant 0 : index
    %18 = vector.load %arg6[%c1_7, %c0_8] : memref<2x128xf32, #tpu.memory_space<vmem>>, vector<1x128xf32>
    %19 = vector.shape_cast %18 : vector<1x128xf32> to vector<1x128xf32>
    %20 = vector.broadcast %19 : vector<1x128xf32> to vector<8x128xf32>
    %c0_9 = arith.constant 0 : index
    %c0_10 = arith.constant 0 : index
    %c0_11 = arith.constant 0 : index
    %21 = vector.load %arg8[%c0_9, %c0_10, %c0_11] : memref<5x8x128xf32, #tpu.memory_space<vmem>>, vector<1x8x128xf32>
    %22 = vector.shape_cast %21 : vector<1x8x128xf32> to vector<8x128xf32>
    %c1_12 = arith.constant 1 : index
    %c0_13 = arith.constant 0 : index
    %c0_14 = arith.constant 0 : index
    %23 = vector.load %arg8[%c1_12, %c0_13, %c0_14] : memref<5x8x128xf32, #tpu.memory_space<vmem>>, vector<1x8x128xf32>
    %24 = vector.shape_cast %23 : vector<1x8x128xf32> to vector<8x128xf32>
    %c2_15 = arith.constant 2 : index
    %c0_16 = arith.constant 0 : index
    %c0_17 = arith.constant 0 : index
    %25 = vector.load %arg8[%c2_15, %c0_16, %c0_17] : memref<5x8x128xf32, #tpu.memory_space<vmem>>, vector<1x8x128xf32>
    %26 = vector.shape_cast %25 : vector<1x8x128xf32> to vector<8x128xf32>
    %c3_18 = arith.constant 3 : index
    %c0_19 = arith.constant 0 : index
    %c0_20 = arith.constant 0 : index
    %27 = vector.load %arg8[%c3_18, %c0_19, %c0_20] : memref<5x8x128xf32, #tpu.memory_space<vmem>>, vector<1x8x128xf32>
    %28 = vector.shape_cast %27 : vector<1x8x128xf32> to vector<8x128xf32>
    %c4 = arith.constant 4 : index
    %c0_21 = arith.constant 0 : index
    %c0_22 = arith.constant 0 : index
    %29 = vector.load %arg8[%c4, %c0_21, %c0_22] : memref<5x8x128xf32, #tpu.memory_space<vmem>>, vector<1x8x128xf32>
    %30 = vector.shape_cast %29 : vector<1x8x128xf32> to vector<8x128xf32>
    %c0_23 = arith.constant 0 : index
    %c0_24 = arith.constant 0 : index
    %c0_25 = arith.constant 0 : index
    %31 = vector.load %arg9[%c0_23, %c0_24, %c0_25] : memref<2x8x128xf32, #tpu.memory_space<vmem>>, vector<1x8x128xf32>
    %32 = vector.shape_cast %31 : vector<1x8x128xf32> to vector<8x128xf32>
    %c1_26 = arith.constant 1 : index
    %c0_27 = arith.constant 0 : index
    %c0_28 = arith.constant 0 : index
    %33 = vector.load %arg9[%c1_26, %c0_27, %c0_28] : memref<2x8x128xf32, #tpu.memory_space<vmem>>, vector<1x8x128xf32>
    %34 = vector.shape_cast %33 : vector<1x8x128xf32> to vector<8x128xf32>
    %c0_i32_29 = arith.constant 0 : i32
    %c8_i32 = arith.constant 8 : i32
    %35 = arith.addi %c0_i32_29, %c8_i32 : i32
    %c1_i32 = arith.constant 1 : i32
    %36:7 = scf.for %arg10 = %c0_i32_29 to %35 step %c1_i32 iter_args(%arg11 = %22, %arg12 = %24, %arg13 = %26, %arg14 = %28, %arg15 = %30, %arg16 = %32, %arg17 = %34) -> (vector<8x128xf32>, vector<8x128xf32>, vector<8x128xf32>, vector<8x128xf32>, vector<8x128xf32>, vector<8x128xf32>, vector<8x128xf32>)  : i32 {
      %58 = arith.index_cast %arg10 : i32 to index
      %c0_52 = arith.constant 0 : index
      %c0_53 = arith.constant 0 : index
      %59 = vector.load %arg1[%58, %c0_52, %c0_53] : memref<8x8x128xf32, #tpu.memory_space<vmem>>, vector<1x8x128xf32>
      %60 = vector.shape_cast %59 : vector<1x8x128xf32> to vector<8x128xf32>
      %61 = arith.subf %arg12, %arg11 : vector<8x128xf32>
      %62 = arith.mulf %8, %61 : vector<8x128xf32>
      %63 = arith.addf %arg11, %62 : vector<8x128xf32>
      %64 = arith.mulf %5, %arg12 : vector<8x128xf32>
      %65 = arith.subf %arg12, %64 : vector<8x128xf32>
      %cst = arith.constant 1.000000e+00 : f32
      %66 = vector.broadcast %cst : f32 to vector<8x128xf32>
      %67 = arith.subf %63, %66 : vector<8x128xf32>
      %cst_54 = arith.constant 0.000000e+00 : f32
      %68 = vector.broadcast %cst_54 : f32 to vector<8x128xf32>
      %69 = arith.cmpf ogt, %67, %68 : vector<8x128xf32>
      %70 = arith.extui %69 : vector<8x128xi1> to vector<8x128xi32>
      %71 = arith.sitofp %70 : vector<8x128xi32> to vector<8x128xf32>
      %cst_55 = arith.constant 1.000000e+00 : f32
      %72 = vector.broadcast %cst_55 : f32 to vector<8x128xf32>
      %73 = arith.subf %72, %71 : vector<8x128xf32>
      %74 = arith.mulf %73, %63 : vector<8x128xf32>
      %75 = arith.addf %65, %60 : vector<8x128xf32>
      %76 = arith.subf %arg15, %arg14 : vector<8x128xf32>
      %77 = arith.mulf %14, %76 : vector<8x128xf32>
      %78 = arith.addf %arg14, %77 : vector<8x128xf32>
      %79 = arith.mulf %11, %arg15 : vector<8x128xf32>
      %80 = arith.subf %arg15, %79 : vector<8x128xf32>
      %cst_56 = arith.constant 1.000000e+00 : f32
      %81 = vector.broadcast %cst_56 : f32 to vector<8x128xf32>
      %82 = arith.subf %78, %81 : vector<8x128xf32>
      %cst_57 = arith.constant 0.000000e+00 : f32
      %83 = vector.broadcast %cst_57 : f32 to vector<8x128xf32>
      %84 = arith.cmpf ogt, %82, %83 : vector<8x128xf32>
      %85 = arith.extui %84 : vector<8x128xi1> to vector<8x128xi32>
      %86 = arith.sitofp %85 : vector<8x128xi32> to vector<8x128xf32>
      %cst_58 = arith.constant 1.000000e+00 : f32
      %87 = vector.broadcast %cst_58 : f32 to vector<8x128xf32>
      %88 = arith.subf %87, %86 : vector<8x128xf32>
      %89 = arith.mulf %88, %78 : vector<8x128xf32>
      %c0_59 = arith.constant 0 : index
      %c0_60 = arith.constant 0 : index
      %90 = vector.load %arg2[%c0_59, %c0_60] : memref<128x128xf32, #tpu.memory_space<vmem>>, vector<128x128xf32>
      %cst_61 = arith.constant dense<0.000000e+00> : vector<8x128xf32>
      %91 = tpu.matmul %71, %90, %cst_61 {dimension_numbers = #tpu.dot_dimension_numbers<[1], [0], [0], [1], [0, 0, 1, 1], [], []>} : vector<8x128xf32>, vector<128x128xf32>, vector<8x128xf32> -> vector<8x128xf32>
      %92 = arith.addf %80, %91 : vector<8x128xf32>
      %c0_62 = arith.constant 0 : index
      %c0_63 = arith.constant 0 : index
      %93 = vector.load %arg3[%c0_62, %c0_63] : memref<128x128xf32, #tpu.memory_space<vmem>>, vector<128x128xf32>
      %cst_64 = arith.constant dense<0.000000e+00> : vector<8x128xf32>
      %94 = tpu.matmul %arg13, %93, %cst_64 {dimension_numbers = #tpu.dot_dimension_numbers<[1], [0], [0], [1], [0, 0, 1, 1], [], []>} : vector<8x128xf32>, vector<128x128xf32>, vector<8x128xf32> -> vector<8x128xf32>
      %95 = arith.addf %92, %94 : vector<8x128xf32>
      %c0_65 = arith.constant 0 : index
      %c0_66 = arith.constant 0 : index
      %96 = vector.load %arg4[%c0_65, %c0_66] : memref<128x128xf32, #tpu.memory_space<vmem>>, vector<128x128xf32>
      %cst_67 = arith.constant dense<0.000000e+00> : vector<8x128xf32>
      %97 = tpu.matmul %86, %96, %cst_67 {dimension_numbers = #tpu.dot_dimension_numbers<[1], [0], [0], [1], [0, 0, 1, 1], [], []>} : vector<8x128xf32>, vector<128x128xf32>, vector<8x128xf32> -> vector<8x128xf32>
      %98 = arith.addf %arg17, %97 : vector<8x128xf32>
      %99 = arith.subf %98, %arg16 : vector<8x128xf32>
      %100 = arith.mulf %20, %99 : vector<8x128xf32>
      %101 = arith.addf %arg16, %100 : vector<8x128xf32>
      %102 = arith.mulf %17, %98 : vector<8x128xf32>
      %103 = arith.subf %98, %102 : vector<8x128xf32>
      %104 = arith.index_cast %arg10 : i32 to index
      %c0_68 = arith.constant 0 : index
      %c0_69 = arith.constant 0 : index
      %105 = vector.load %arg7[%104, %c0_68, %c0_69] : memref<8x8x128xf32, #tpu.memory_space<vmem>>, vector<1x8x128xf32>
      %106 = vector.shape_cast %105 : vector<1x8x128xf32> to vector<8x128xf32>
      %107 = vector.shape_cast %101 : vector<8x128xf32> to vector<1x8x128xf32>
      tpu.vector_store %arg7[%104, %c0_68, %c0_69], %107 {strides = array<i32>} : memref<8x8x128xf32, #tpu.memory_space<vmem>>, vector<1x8x128xf32>,
      scf.yield %74, %75, %86, %89, %95, %101, %103 : vector<8x128xf32>, vector<8x128xf32>, vector<8x128xf32>, vector<8x128xf32>, vector<8x128xf32>, vector<8x128xf32>, vector<8x128xf32>
    }
    %c8_i32_30 = arith.constant 8 : i32
    %c0_31 = arith.constant 0 : index
    %c0_32 = arith.constant 0 : index
    %c0_33 = arith.constant 0 : index
    %37 = vector.load %arg8[%c0_31, %c0_32, %c0_33] : memref<5x8x128xf32, #tpu.memory_space<vmem>>, vector<1x8x128xf32>
    %38 = vector.shape_cast %37 : vector<1x8x128xf32> to vector<8x128xf32>
    %39 = vector.shape_cast %36#0 : vector<8x128xf32> to vector<1x8x128xf32>
    tpu.vector_store %arg8[%c0_31, %c0_32, %c0_33], %39 {strides = array<i32>} : memref<5x8x128xf32, #tpu.memory_space<vmem>>, vector<1x8x128xf32>,
    %c1_34 = arith.constant 1 : index
    %c0_35 = arith.constant 0 : index
    %c0_36 = arith.constant 0 : index
    %40 = vector.load %arg8[%c1_34, %c0_35, %c0_36] : memref<5x8x128xf32, #tpu.memory_space<vmem>>, vector<1x8x128xf32>
    %41 = vector.shape_cast %40 : vector<1x8x128xf32> to vector<8x128xf32>
    %42 = vector.shape_cast %36#1 : vector<8x128xf32> to vector<1x8x128xf32>
    tpu.vector_store %arg8[%c1_34, %c0_35, %c0_36], %42 {strides = array<i32>} : memref<5x8x128xf32, #tpu.memory_space<vmem>>, vector<1x8x128xf32>,
    %c2_37 = arith.constant 2 : index
    %c0_38 = arith.constant 0 : index
    %c0_39 = arith.constant 0 : index
    %43 = vector.load %arg8[%c2_37, %c0_38, %c0_39] : memref<5x8x128xf32, #tpu.memory_space<vmem>>, vector<1x8x128xf32>
    %44 = vector.shape_cast %43 : vector<1x8x128xf32> to vector<8x128xf32>
    %45 = vector.shape_cast %36#2 : vector<8x128xf32> to vector<1x8x128xf32>
    tpu.vector_store %arg8[%c2_37, %c0_38, %c0_39], %45 {strides = array<i32>} : memref<5x8x128xf32, #tpu.memory_space<vmem>>, vector<1x8x128xf32>,
    %c3_40 = arith.constant 3 : index
    %c0_41 = arith.constant 0 : index
    %c0_42 = arith.constant 0 : index
    %46 = vector.load %arg8[%c3_40, %c0_41, %c0_42] : memref<5x8x128xf32, #tpu.memory_space<vmem>>, vector<1x8x128xf32>
    %47 = vector.shape_cast %46 : vector<1x8x128xf32> to vector<8x128xf32>
    %48 = vector.shape_cast %36#3 : vector<8x128xf32> to vector<1x8x128xf32>
    tpu.vector_store %arg8[%c3_40, %c0_41, %c0_42], %48 {strides = array<i32>} : memref<5x8x128xf32, #tpu.memory_space<vmem>>, vector<1x8x128xf32>,
    %c4_43 = arith.constant 4 : index
    %c0_44 = arith.constant 0 : index
    %c0_45 = arith.constant 0 : index
    %49 = vector.load %arg8[%c4_43, %c0_44, %c0_45] : memref<5x8x128xf32, #tpu.memory_space<vmem>>, vector<1x8x128xf32>
    %50 = vector.shape_cast %49 : vector<1x8x128xf32> to vector<8x128xf32>
    %51 = vector.shape_cast %36#4 : vector<8x128xf32> to vector<1x8x128xf32>
    tpu.vector_store %arg8[%c4_43, %c0_44, %c0_45], %51 {strides = array<i32>} : memref<5x8x128xf32, #tpu.memory_space<vmem>>, vector<1x8x128xf32>,
    %c0_46 = arith.constant 0 : index
    %c0_47 = arith.constant 0 : index
    %c0_48 = arith.constant 0 : index
    %52 = vector.load %arg9[%c0_46, %c0_47, %c0_48] : memref<2x8x128xf32, #tpu.memory_space<vmem>>, vector<1x8x128xf32>
    %53 = vector.shape_cast %52 : vector<1x8x128xf32> to vector<8x128xf32>
    %54 = vector.shape_cast %36#5 : vector<8x128xf32> to vector<1x8x128xf32>
    tpu.vector_store %arg9[%c0_46, %c0_47, %c0_48], %54 {strides = array<i32>} : memref<2x8x128xf32, #tpu.memory_space<vmem>>, vector<1x8x128xf32>,
    %c1_49 = arith.constant 1 : index
    %c0_50 = arith.constant 0 : index
    %c0_51 = arith.constant 0 : index
    %55 = vector.load %arg9[%c1_49, %c0_50, %c0_51] : memref<2x8x128xf32, #tpu.memory_space<vmem>>, vector<1x8x128xf32>
    %56 = vector.shape_cast %55 : vector<1x8x128xf32> to vector<8x128xf32>
    %57 = vector.shape_cast %36#6 : vector<8x128xf32> to vector<1x8x128xf32>
    tpu.vector_store %arg9[%c1_49, %c0_50, %c0_51], %57 {strides = array<i32>} : memref<2x8x128xf32, #tpu.memory_space<vmem>>, vector<1x8x128xf32>,
    return
  }
  func.func @transform_0(%arg0: i32) -> (i32, i32, i32) {
    %c0_i32 = arith.constant 0 : i32
    %c0_i32_0 = arith.constant 0 : i32
    %c0_i32_1 = arith.constant 0 : i32
    return %arg0, %c0_i32, %c0_i32_0 : i32, i32, i32
  }
  func.func @transform_1(%arg0: i32) -> (i32, i32) {
    %c0_i32 = arith.constant 0 : i32
    %c0_i32_0 = arith.constant 0 : i32
    %c0_i32_1 = arith.constant 0 : i32
    return %c0_i32, %c0_i32_0 : i32, i32
  }
  func.func @transform_2(%arg0: i32) -> (i32, i32) {
    %c0_i32 = arith.constant 0 : i32
    %c0_i32_0 = arith.constant 0 : i32
    %c0_i32_1 = arith.constant 0 : i32
    return %c0_i32, %c0_i32_0 : i32, i32
  }
  func.func @transform_3(%arg0: i32) -> (i32, i32) {
    %c0_i32 = arith.constant 0 : i32
    %c0_i32_0 = arith.constant 0 : i32
    %c0_i32_1 = arith.constant 0 : i32
    return %c0_i32, %c0_i32_0 : i32, i32
  }
  func.func @transform_4(%arg0: i32) -> (i32, i32) {
    %c0_i32 = arith.constant 0 : i32
    %c0_i32_0 = arith.constant 0 : i32
    %c0_i32_1 = arith.constant 0 : i32
    return %c0_i32, %c0_i32_0 : i32, i32
  }
  func.func @transform_5(%arg0: i32) -> (i32, i32) {
    %c0_i32 = arith.constant 0 : i32
    %c0_i32_0 = arith.constant 0 : i32
    %c0_i32_1 = arith.constant 0 : i32
    return %c0_i32, %c0_i32_0 : i32, i32
  }
  func.func @transform_6(%arg0: i32) -> (i32, i32, i32) {
    %c0_i32 = arith.constant 0 : i32
    %c0_i32_0 = arith.constant 0 : i32
    %c0_i32_1 = arith.constant 0 : i32
    return %arg0, %c0_i32, %c0_i32_0 : i32, i32, i32
  }
  func.func @transform_7(%arg0: i32) -> (i32, i32, i32) {
    %c0_i32 = arith.constant 0 : i32
    %c0_i32_0 = arith.constant 0 : i32
    %c0_i32_1 = arith.constant 0 : i32
    %c0_i32_2 = arith.constant 0 : i32
    return %c0_i32, %c0_i32_0, %c0_i32_1 : i32, i32, i32
  }
  func.func @transform_8(%arg0: i32) -> (i32, i32, i32) {
    %c0_i32 = arith.constant 0 : i32
    %c0_i32_0 = arith.constant 0 : i32
    %c0_i32_1 = arith.constant 0 : i32
    %c0_i32_2 = arith.constant 0 : i32
    return %c0_i32, %c0_i32_0, %c0_i32_1 : i32, i32, i32
  }
}

</mosaic_0001>

<bundles_post_ra>
// kernel: tpu_custom_call.1
= control target key start
LH: loop header
LB: loop body
LE: loop exit
PB: predicated region body
PF: predicated region fallthrough
CT: control target
= control target key end

     0   :  { %14 = vsyncpa [#allocation3], 0  ;;  %s1432_s0 = inlined_call_operand.hbm [shape: f32[8,8,128], index: 0, kind: input, shape index: {}]   ;;  %s1433_s1 = inlined_call_operand.hbm [shape: f32[128,128], index: 1, kind: input, shape index: {}]   ;;  %s1434_s2 = inlined_call_operand.hbm [shape: f32[128,128], index: 2, kind: input, shape index: {}]   ;;  %s1435_s3 = inlined_call_operand.hbm [shape: f32[128,128], index: 3, kind: input, shape index: {}]   ;;  %s1436_s4 = inlined_call_operand.vmem [shape: f32[4,128], index: 4, kind: input, shape index: {}]   ;;  %s1437_s5 = inlined_call_operand.vmem [shape: f32[2,128], index: 5, kind: input, shape index: {}]   ;;  %s1438_s6 = inlined_call_operand.hbm [shape: f32[8,8,128], index: 6, kind: output, shape index: {0}]   ;;  %s1439_s7 = inlined_call_operand.hbm [shape: f32[5,8,128], index: 7, kind: output, shape index: {1}]   ;;  %s1440_s8 = inlined_call_operand.hbm [shape: f32[2,8,128], index: 8, kind: output, shape index: {2}]  }
   0x1   :  { %15 = vsyncpa [#allocation6], 0 }
   0x2   :  { %16 = vsyncpa [#allocation9], 0 }
   0x3   :  { %17 = vsyncpa [#allocation4], 0 }
   0x4   :  { %18 = vsyncpa [#allocation12], 0  ;;  %s1080_s27 = smov [#allocation5]   ;;  %s1081_s29 = smov [#allocation2]  }
   0x5   :  { %s36_s28 = sshll.u32 %s1080_s27, 4  ;;  %s24_s30 = sshll.u32 %s1081_s29, 4  ;;  %s37_s28 = int_to_ptr.vmem [resolvable:$true] %s36_s28  ;;  %s1139_s30 = int_to_ptr.vmem [resolvable:$true] %s24_s30 }
   0x6   :  { %s852_s11 = scalar_lea.hbm %s1433_s1, 2048 }
   0x7   :  { %p853_p0 = scmp.ne.s32.totalorder %s1433_s1, %s852_s11  ;;  %p856_p1 = scmp.lt.u32.totalorder %s852_s11, %s1433_s1 }
   0x9   :  { %p858_p2 = pnand %p856_p1, %p853_p0 }
   0xb   :  { %861 = shalt.err (!%p858_p2)
}
   0xc   :  { %s862_s16 = scalar_lea.vmem %s37_s28, 2048  ;;  %p867_p4 = scmp.lt.s32.totalorder %s37_s28, %s37_s28 }
   0xd   :  { %p863_p3 = scmp.ne.s32.totalorder %s37_s28, %s862_s16  ;;  %p868_p5 = scmp.lt.s32.totalorder %s862_s16, %s862_s16 }
   0xf   :  { %p869_p6 = por %p868_p5, %p867_p4 }
  0x11   :  { %p870_p7 = pnand %p869_p6, %p863_p3 }
  0x13   :  { %873 = shalt.err (!%p870_p7)
}
  0x14   :  { %s1082_s17 = smov 128   ;;  %s1083_s18 = smov 8  }
  0x15   :  { %42 = dma.hbm_to_vmem [thread:$0]  %s1433_s1, 2048, %s37_s28, [#allocation6], %s1082_s17, %s1082_s17, %s1083_s18  }
  0x16   :  { %s874_s23 = scalar_lea.hbm %s1432_s0, 1024 }
  0x17   :  { %p875_p8 = scmp.ne.s32.totalorder %s1432_s0, %s874_s23  ;;  %p878_p9 = scmp.lt.u32.totalorder %s874_s23, %s1432_s0 }
  0x19   :  { %p880_p10 = pnand %p878_p9, %p875_p8 }
  0x1b   :  { %883 = shalt.err (!%p880_p10)
}
  0x1c   :  { %s884_s29 = scalar_lea.vmem %s1139_s30, 1024  ;;  %p889_p12 = scmp.lt.s32.totalorder %s1139_s30, %s1139_s30 }
  0x1d   :  { %p885_p11 = scmp.ne.s32.totalorder %s1139_s30, %s884_s29  ;;  %p890_p13 = scmp.lt.s32.totalorder %s884_s29, %s884_s29 }
  0x1f   :  { %p891_p0 = por %p890_p13, %p889_p12 }
  0x21   :  { %p892_p1 = pnand %p891_p0, %p885_p11 }
  0x23   :  { %895 = shalt.err (!%p892_p1)
}
  0x24   :  { %30 = dma.hbm_to_vmem [thread:$0]  %s1432_s0, 1024, %s1139_s30, [#allocation3], %s1082_s17, %s1082_s17, %s1083_s18  }
  0x25   :  { %s1084_s9 = smov [#allocation7]   ;;  %s1085_s11 = smov [#allocation8]  }
  0x26   :  { %s48_s10 = sshll.u32 %s1084_s9, 4  ;;  %s60_s12 = sshll.u32 %s1085_s11, 4  ;;  %s49_s10 = int_to_ptr.vmem [resolvable:$true] %s48_s10  ;;  %s1176_s12 = int_to_ptr.vmem [resolvable:$true] %s60_s12 }
  0x27   :  { %s896_s15 = scalar_lea.hbm %s1434_s2, 2048 }
  0x28   :  { %p897_p2 = scmp.ne.s32.totalorder %s1434_s2, %s896_s15  ;;  %p900_p3 = scmp.lt.u32.totalorder %s896_s15, %s1434_s2 }
  0x2a   :  { %p902_p4 = pnand %p900_p3, %p897_p2 }
  0x2c   :  { %905 = shalt.err (!%p902_p4)
}
  0x2d   :  { %s906_s0 = scalar_lea.vmem %s49_s10, 2048  ;;  %p911_p6 = scmp.lt.s32.totalorder %s49_s10, %s49_s10 }
  0x2e   :  { %p907_p5 = scmp.ne.s32.totalorder %s49_s10, %s906_s0  ;;  %p912_p7 = scmp.lt.s32.totalorder %s906_s0, %s906_s0 }
  0x30   :  { %p913_p8 = por %p912_p7, %p911_p6 }
  0x32   :  { %p914_p9 = pnand %p913_p8, %p907_p5 }
  0x34   :  { %917 = shalt.err (!%p914_p9)
}
  0x35   :  { %54 = dma.hbm_to_vmem [thread:$0]  %s1434_s2, 2048, %s49_s10, [#allocation6], %s1082_s17, %s1082_s17, %s1083_s18  }
  0x36   :  { %s918_s25 = scalar_lea.hbm %s1435_s3, 2048 }
  0x37   :  { %p919_p10 = scmp.ne.s32.totalorder %s1435_s3, %s918_s25  ;;  %p922_p11 = scmp.lt.u32.totalorder %s918_s25, %s1435_s3 }
  0x39   :  { %p924_p12 = pnand %p922_p11, %p919_p10 }
  0x3b   :  { %927 = shalt.err (!%p924_p12)
}
  0x3c   :  { %s928_s28 = scalar_lea.vmem %s1176_s12, 2048  ;;  %p933_p0 = scmp.lt.s32.totalorder %s1176_s12, %s1176_s12 }
  0x3d   :  { %p929_p13 = scmp.ne.s32.totalorder %s1176_s12, %s928_s28  ;;  %p934_p1 = scmp.lt.s32.totalorder %s928_s28, %s928_s28 }
  0x3f   :  { %p935_p2 = por %p934_p1, %p933_p0 }
  0x41   :  { %p936_p3 = pnand %p935_p2, %p929_p13 }
  0x43   :  { %939 = shalt.err (!%p936_p3)
}
  0x44   :  { %66 = dma.hbm_to_vmem [thread:$0]  %s1435_s3, 2048, %s1176_s12, [#allocation9], %s1082_s17, %s1082_s17, %s1083_s18  }
  0x45   :  { %1038 = dma.done.wait [#allocation3], 1024  }
  0x46   :  { %1039 = vsyncadd [#allocation3], 4294966272 }
  0x47   :  { %1040 = dma.done.wait [#allocation6], 4096  }
  0x48   :  { %1041 = vsyncadd [#allocation6], 4294963200 }
  0x49   :  { %1042 = dma.done.wait [#allocation9], 2048  }
  0x4a   :  { %1043 = vsyncadd [#allocation9], 4294965248  ;;  %v1086_v0 = vmov 0.0   ;;  %v1216_v1 = vld [vmem:[%s1436_s4] ss:$0 sm:$0xff]  ;;  %v1243_v7 = vmov 0.0  }
  0x4b   :  { %87 = vst [vmem:[#allocation11] sm:$0xff] %v1086_v0  ;;  %88 = vst [vmem:[#allocation11 + $0x8] sm:$0xff] %v1086_v0  ;;  %v1221_v2 = vld [vmem:[%s1436_s4 + $0x1] ss:$0 sm:$0xff]  ;;  %v1226_v3 = vld [vmem:[%s1436_s4 + $0x2] ss:$0 sm:$0xff] }
  0x4c   :  { %89 = vst [vmem:[#allocation11 + $0x10] sm:$0xff] %v1086_v0  ;;  %90 = vst [vmem:[#allocation11 + $0x18] sm:$0xff] %v1086_v0  ;;  %v1231_v4 = vld [vmem:[%s1436_s4 + $0x3] ss:$0 sm:$0xff]  ;;  %v1236_v5 = vld [vmem:[%s1437_s5] ss:$0 sm:$0xff] }
  0x4d   :  { %91 = vst [vmem:[#allocation11 + $0x20] sm:$0xff] %v1086_v0  ;;  %92 = vst [vmem:[#allocation13] sm:$0xff] %v1086_v0  ;;  %v1241_v6 = vld [vmem:[%s1437_s5 + $0x1] ss:$0 sm:$0xff]  ;;  %v1245_v8 = vmov 0.0   ;;  %v1247_v9 = vmov 0.0  }
  0x4e   :  { %93 = vst [vmem:[#allocation13 + $0x8] sm:$0xff] %v1086_v0  ;;  %v1249_v10 = vmov 0.0   ;;  %v1251_v11 = vmov 0.0   ;;  %v1253_v12 = vmov 0.0   ;;  %v1255_v13 = vmov 0.0   ;;  %s1257_s4 = smov 0  }
  0x4f LB: > { %v175_v14 = vld [vmem:[#allocation5] sm:$0xff]  ;;  %v176_v15 = vld [vmem:[#allocation5 + $0x8] sm:$0xff]  ;;  %v177_v16 = vld [vmem:[#allocation5 + $0x10] sm:$0xff]  ;;  %v1087_v17 = vmov 0.0|0.0   ;;  %vm1088_vm0 = vmmov 0   ;;  %v1089_v20 = vmov 0.0   ;;  %v152_v23 = vsub.f32 %v1070_v12, %v1074_v13  ;;  %s1078_s4 = sphi %s1257_s4, %s141_s4   ;;  %v1074_v13 = vphi %v1255_v13, %v1450_v13   ;;  %v1070_v12 = vphi %v1253_v12, %v1449_v12   ;;  %v1066_v11 = vphi %v1251_v11, %v1448_v11   ;;  %v1062_v10 = vphi %v1249_v10, %v1447_v10   ;;  %v1058_v9 = vphi %v1247_v9, %v1446_v9   ;;  %v1054_v8 = vphi %v1245_v8, %v1445_v8   ;;  %v1050_v7 = vphi %v1243_v7, %v1444_v7  }
  0x50   : > { %699 = vmatprep.subr.bf16.mxu0 %v1087_v17  ;;  %v700_v18 = vpack.c.bf16 %v176_v15, %v175_v14  ;;  %v178_v19 = vld [vmem:[#allocation5 + $0x18] sm:$0xff]  ;;  %747 = vmatprep.subr.bf16.mxu1 %v1087_v17  ;;  %v179_v22 = vld [vmem:[#allocation5 + $0x20] sm:$0xff]  ;;  %v180_v24 = vld [vmem:[#allocation5 + $0x28] sm:$0xff]  ;;  %v164_v31 = vsub.f32 %v1058_v9, %v1062_v10  ;;  %v155_v40 = vmul.f32 %v1070_v12, %v1216_v1  ;;  %s536_s5 = sshll.u32 %s1078_s4, 3  ;;  %s141_s4 = sadd.s32 1, %s1078_s4  }
  0x51   : > { %626 = vmatprep.mubr.msk.f32.mxu0 %vm1088_vm0, %v1089_v20  ;;  %696 = vmatprep.mubr.msk.f32.mxu1 %vm1088_vm0, %v1089_v20  ;;  %v703_v21 = vpack.c.bf16 %v178_v19, %v177_v16  ;;  %v349_v25 = vld [vmem:[#allocation8] sm:$0xff]  ;;  %v350_v26 = vld [vmem:[#allocation8 + $0x8] sm:$0xff]  ;;  %v351_v28 = vld [vmem:[#allocation8 + $0x10] sm:$0xff]  ;;  %v153_v30 = vmul.f32 %v1221_v2, %v152_v23  ;;  %v706_v32 = vpack.c.bf16 %v180_v24, %v179_v22  ;;  %s150_s30 = scalar_lea.vmem [#allocation2], %s536_s5  ;;  %s441_s22 = scalar_lea.vmem [#allocation10], %s536_s5 }
  0x52   : > { %701 = vmatpush3.bf16.msra.mxu0 %v700_v18  ;;  %v748_v27 = vpack.c.bf16 %v350_v26, %v349_v25  ;;  %v352_v29 = vld [vmem:[#allocation8 + $0x18] sm:$0xff]  ;;  %v181_v33 = vld [vmem:[#allocation5 + $0x30] sm:$0xff]  ;;  %v353_v37 = vld [vmem:[#allocation8 + $0x20] sm:$0xff]  ;;  %v165_v39 = vmul.f32 %v1231_v4, %v164_v31  ;;  %v156_v51 = vsub.f32 %v1070_v12, %v155_v40  ;;  %p138_p4 = scmp.ge.s32.totalorder %s141_s4, 8  }
  0x53   : > { %702 = vmatprep.subr.bf16.mxu0 %v1087_v17  ;;  %v751_v34 = vpack.c.bf16 %v352_v29, %v351_v28  ;;  %v154_v35 = vadd.f32 %v1074_v13, %v153_v30  ;;  %v182_v36 = vld [vmem:[#allocation5 + $0x38] sm:$0xff]  ;;  %v354_v38 = vld [vmem:[#allocation8 + $0x28] sm:$0xff]  ;;  %v183_v44 = vld [vmem:[#allocation5 + $0x40] sm:$0xff]  ;;  %s1091_s23 = smov (%p138_p4), [#allocation11]   ;;  %s1092_s25 = smov (%p138_p4), [#allocation10]  }
  0x54   : > { %749 = vmatpush3.bf16.msra.mxu1 %v748_v27  ;;  %v166_v42 = vadd.f32 %v1062_v10, %v165_v39  ;;  %v709_v43 = vpack.c.bf16 %v182_v36, %v181_v33  ;;  %v754_v45 = vpack.c.bf16 %v354_v38, %v353_v37  ;;  %v184_v46 = vld [vmem:[#allocation5 + $0x48] sm:$0xff]  ;;  %v355_v48 = vld [vmem:[#allocation8 + $0x30] sm:$0xff]  ;;  %v356_v49 = vld [vmem:[#allocation8 + $0x38] sm:$0xff]  ;;  %s467_s24 = sshll.u32 (%p138_p4), %s1091_s23, 4  ;;  %s455_s26 = sshll.u32 (%p138_p4), %s1092_s25, 4  ;;  %s468_s24 = int_to_ptr.vmem [resolvable:$true] %s467_s24  ;;  %s1380_s26 = int_to_ptr.vmem [resolvable:$true] %s455_s26 }
  0x55   : > { %750 = vmatprep.subr.bf16.mxu1 %v1087_v17  ;;  %v1294_v41 = vadd.f32 -1.0, %v154_v35  ;;  %v712_v53 = vpack.c.bf16 %v184_v46, %v183_v44  ;;  %v185_v54 = vld [vmem:[#allocation5 + $0x50] sm:$0xff]  ;;  %v186_v55 = vld [vmem:[#allocation5 + $0x58] sm:$0xff]  ;;  %v757_v57 = vpack.c.bf16 %v356_v49, %v355_v48  ;;  %v357_v59 = vld [vmem:[#allocation8 + $0x40] sm:$0xff]  ;;  %s940_s27 = scalar_lea.vmem (%p138_p4), %s468_s24, 640  ;;  %p945_p6 = scmp.lt.s32.totalorder (%p138_p4), %s468_s24, %s468_s24 }
  0x56   : > { %704 = vmatpush3.bf16.msra.mxu0 %v703_v21  ;;  %v1303_v50 = vadd.f32 -1.0, %v166_v42  ;;  %v358_v60 = vld [vmem:[#allocation8 + $0x48] sm:$0xff]  ;;  %v151_v62 = vld [vmem:[%s150_s30] sm:$0xff]  ;;  %v359_v18 = vld [vmem:[#allocation8 + $0x50] sm:$0xff]  ;;  %p941_p5 = scmp.ne.s32.totalorder (%p138_p4), %s468_s24, %s940_s27  ;;  %p946_p7 = scmp.lt.s32.totalorder (%p138_p4), %s940_s27, %s940_s27 }
  0x57   : > { %705 = vmatprep.subr.bf16.mxu0 %v1087_v17  ;;  %vm158_vm1 = vcmp.gt.f32.partialorder %v1294_v41, 0.0  ;;  %v1319_v12 = vadd.f32 %v156_v51, %v151_v62   ;;  %v187_v14 = vld [vmem:[#allocation5 + $0x60] sm:$0xff]  ;;  %v760_v15 = vpack.c.bf16 %v358_v60, %v357_v59  ;;  %v188_v16 = vld [vmem:[#allocation5 + $0x68] sm:$0xff]  ;;  %v360_v19 = vld [vmem:[#allocation8 + $0x58] sm:$0xff] }
  0x58   : > { %752 = vmatpush3.bf16.msra.mxu1 %v751_v34  ;;  %v538_v47 = vsel %vm158_vm1, 1.0, %v1089_v20  ;;  %vm170_vm2 = vcmp.gt.f32.partialorder %v1303_v50, 0.0  ;;  %v718_v21 = vpack.c.bf16 %v188_v16, %v187_v14  ;;  %v189_v22 = vld [vmem:[#allocation5 + $0x70] sm:$0xff]  ;;  %v763_v23 = vpack.c.bf16 %v360_v19, %v359_v18  ;;  %v362_v24 = vld [vmem:[#allocation8 + $0x68] sm:$0xff]  ;;  %v262_v26 = vld [vmem:[#allocation7] sm:$0xff]  ;;  %p947_p8 = por (%p138_p4), %p946_p7, %p945_p6 }
  0x59   : > { %753 = vmatprep.subr.bf16.mxu1 %v1087_v17  ;;  %v161_v52 = vsub.f32 1.0, %v538_v47  ;;  %v1312_v58 = vsel %vm170_vm2, 1.0, %v1089_v20   ;;  %v1442_v63 = vmov %v1319_v12  ;;  %v361_v12 = vld [vmem:[#allocation8 + $0x60] sm:$0xff]  ;;  %v263_v28 = vld [vmem:[#allocation7 + $0x8] sm:$0xff]  ;;  %v363_v29 = vld [vmem:[#allocation8 + $0x70] sm:$0xff] }
  0x5a   : > { %707 = vmatpush3.bf16.msra.mxu0 %v706_v32  ;;  %v173_v61 = vsub.f32 1.0, %v1312_v58  ;;  %v766_v27 = vpack.c.bf16 %v362_v24, %v361_v12  ;;  %v364_v30 = vld [vmem:[#allocation8 + $0x78] sm:$0xff]  ;;  %v724_v31 = vpack.c.bf16 %v263_v28, %v262_v26  ;;  %v264_v33 = vld [vmem:[#allocation7 + $0x10] sm:$0xff]  ;;  %v266_v37 = vld [vmem:[#allocation7 + $0x20] sm:$0xff]  ;;  %v1449_v12 = vmov %v1442_v63  ;;  %444 = vst [vmem:[#allocation11 + $0x8] sm:$0xff] (%p138_p4), %v1442_v63  ;;  %p948_p9 = pnand (%p138_p4), %p947_p8, %p941_p5 }
  0x5b   : > { %708 = vmatprep.subr.bf16.mxu0 %v1087_v17  ;;  %v1307_v13 = vmul.f32 %v161_v52, %v154_v35   ;;  %v769_v32 = vpack.c.bf16 %v364_v30, %v363_v29  ;;  %v265_v34 = vld [vmem:[#allocation7 + $0x18] sm:$0xff]  ;;  %v1090_v35 = vmov 1.0   ;;  %v267_v38 = vld [vmem:[#allocation7 + $0x28] sm:$0xff]  ;;  %v268_v40 = vld [vmem:[#allocation7 + $0x30] sm:$0xff]  ;;  %445 = vst [vmem:[#allocation11 + $0x10] sm:$0xff] (%p138_p4), %v1312_v58 }
  0x5c   : > { %755 = vmatpush3.bf16.msra.mxu1 %v754_v45  ;;  %v1321_v10 = vmul.f32 %v173_v61, %v166_v42   ;;  %v727_v36 = vpack.c.bf16 %v265_v34, %v264_v33  ;;  %v730_v39 = vpack.c.bf16 %v267_v38, %v266_v37  ;;  %v269_v41 = vld [vmem:[#allocation7 + $0x38] sm:$0xff]  ;;  %v271_v44 = vld [vmem:[#allocation7 + $0x48] sm:$0xff]  ;;  %v274_v48 = vld [vmem:[#allocation7 + $0x60] sm:$0xff] }
  0x5d   : > { %v1441_v56 = vmov %v1307_v13  ;;  %756 = vmatprep.subr.bf16.mxu1 %v1087_v17  ;;  %v715_v13 = vpack.c.bf16 %v186_v55, %v185_v54  ;;  %v733_v42 = vpack.c.bf16 %v269_v41, %v268_v40  ;;  %v273_v46 = vld [vmem:[#allocation7 + $0x58] sm:$0xff]  ;;  %v275_v49 = vld [vmem:[#allocation7 + $0x68] sm:$0xff]  ;;  %v276_v51 = vld [vmem:[#allocation7 + $0x70] sm:$0xff] }
  0x5e   : > { %710 = vmatpush3.bf16.msra.mxu0 %v709_v43  ;;  %v1443_v0 = vmov %v1321_v10  ;;  %v190_v10 = vld [vmem:[#allocation5 + $0x78] sm:$0xff]  ;;  %v270_v43 = vld [vmem:[#allocation7 + $0x40] sm:$0xff]  ;;  %v742_v50 = vpack.c.bf16 %v275_v49, %v274_v48  ;;  %443 = vst [vmem:[#allocation11] sm:$0xff] (%p138_p4), %v1441_v56 }
  0x5f   : > { %711 = vmatprep.subr.bf16.mxu0 %v1087_v17  ;;  %v721_v25 = vpack.c.bf16 %v190_v10, %v189_v22  ;;  %v736_v45 = vpack.c.bf16 %v271_v44, %v270_v43  ;;  %v277_v52 = vld [vmem:[#allocation7 + $0x78] sm:$0xff]  ;;  %v1447_v10 = vmov %v1443_v0  ;;  %446 = vst [vmem:[#allocation11 + $0x18] sm:$0xff] (%p138_p4), %v1443_v0 }
  0x60   : > { %758 = vmatpush3.bf16.msra.mxu1 %v757_v57 }
  0x61   : > { %759 = vmatprep.subr.bf16.mxu1 %v1087_v17 }
  0x62   : > { %713 = vmatpush3.bf16.msra.mxu0 %v712_v53  ;;  %v745_v53 = vpack.c.bf16 %v277_v52, %v276_v51 }
  0x63   : > { %714 = vmatprep.subr.bf16.mxu0 %v1087_v17 }
  0x64   : > { %761 = vmatpush3.bf16.msra.mxu1 %v760_v15 }
  0x65   : > { %762 = vmatprep.subr.bf16.mxu1 %v1087_v17 }
  0x66   : > { %716 = vmatpush3.bf16.msra.mxu0 %v715_v13 }
  0x67   : > { %717 = vmatprep.subr.bf16.mxu0 %v1087_v17 }
  0x68   : > { %764 = vmatpush3.bf16.msra.mxu1 %v763_v23 }
  0x69   : > { %765 = vmatprep.subr.bf16.mxu1 %v1087_v17 }
  0x6a   : > { %719 = vmatpush3.bf16.msra.mxu0 %v718_v21 }
  0x6b   : > { %720 = vmatprep.subr.bf16.mxu0 %v1087_v17 }
  0x6c   : > { %767 = vmatpush3.bf16.msra.mxu1 %v766_v27 }
  0x6d   : > { %768 = vmatprep.subr.bf16.mxu1 %v1087_v17 }
  0x6e   : > { %722 = vmatpush3.bf16.msra.mxu0 %v721_v25 }
  0x6f   : > { %723 = vmatprep.subr.bf16.mxu0 %v1087_v17 }
  0x70   : > { %770 = vmatpush3.bf16.msra.mxu1 %v769_v32 }
  0x71   : > { %627 = vmatmul.mubr.msk.f32.vlgmr.msra.gmra.mrb[0].mxu0 %vm158_vm1, %v1090_v35 }
  0x72   : > { %725 = vmatpush3.bf16.msra.mxu0 %v724_v31  ;;  %661 = vmatprep.mubr.msk.f32.mxu0 %vm1088_vm0, %v1089_v20  ;;  %v272_v20 = vld [vmem:[#allocation7 + $0x50] sm:$0xff] }
  0x73   : > { %726 = vmatprep.subr.bf16.mxu0 %v1087_v17  ;;  %697 = vmatmul.mubr.msk.f32.vlgmr.msra.gmra.mrb[0].mxu1 %vm170_vm2, %v1090_v35  ;;  %v739_v47 = vpack.c.bf16 %v273_v46, %v272_v20 }
  0x76   : > { %728 = vmatpush3.bf16.msra.mxu0 %v727_v36 }
  0x77   : > { %729 = vmatprep.subr.bf16.mxu0 %v1087_v17 }
  0x7a   : > { %731 = vmatpush3.bf16.msra.mxu0 %v730_v39 }
  0x7b   : > { %732 = vmatprep.subr.bf16.mxu0 %v1087_v17 }
  0x7e   : > { %734 = vmatpush3.bf16.msra.mxu0 %v733_v42 }
  0x7f   : > { %735 = vmatprep.subr.bf16.mxu0 %v1087_v17 }
  0x82   : > { %737 = vmatpush3.bf16.msra.mxu0 %v736_v45 }
  0x83   : > { %738 = vmatprep.subr.bf16.mxu0 %v1087_v17 }
  0x86   : > { %740 = vmatpush3.bf16.msra.mxu0 %v739_v47 }
  0x87   : > { %741 = vmatprep.subr.bf16.mxu0 %v1087_v17 }
  0x8a   : > { %743 = vmatpush3.bf16.msra.mxu0 %v742_v50 }
  0x8b   : > { %744 = vmatprep.subr.bf16.mxu0 %v1087_v17  ;;  %v167_v17 = vmul.f32 %v1058_v9, %v1226_v3 }
  0x8e   : > { %746 = vmatpush3.bf16.msra.mxu0 %v745_v53 }
  0x91   : > { %662 = vmatmul.mubr.f32.vlgmr.msra.gmra.mrb[0].mxu0 %v1066_v11  ;;  %v168_v11 = vsub.f32 %v1058_v9, %v167_v17 }
 0x146   : > { %v431_v54 = vpop.f32.mrb[0].mxu1 }
 0x147   : > { %v435_v55 = vadd.f32 %v1050_v7, %v431_v54  ;;  %v698_v57 = vpop.f32.mrb[1].mxu1 }
 0x149   : > { %v436_v59 = vsub.f32 %v435_v55, %v1054_v8  ;;  %v439_v60 = vmul.f32 %v1236_v5, %v435_v55 }
 0x14b   : > { %v437_v61 = vmul.f32 %v1241_v6, %v436_v59  ;;  %v440_v62 = vsub.f32 %v435_v55, %v439_v60  }
 0x14d   : > { %v438_v14 = vadd.f32 %v1054_v8, %v437_v61   ;;  %449 = vst [vmem:[#allocation13 + $0x8] sm:$0xff] (%p138_p4), %v440_v62 }
 0x14f   : > { %442 = vst [vmem:[%s441_s22] sm:$0xff] %v438_v14  ;;  %v1445_v8 = vmov %v438_v14  ;;  %448 = vst [vmem:[#allocation13] sm:$0xff] (%p138_p4), %v438_v14 }
 0x161   :  { %140 = sbr.rel (!%p138_p4) target bundleno = 79 (0x4f), region = 94 }
 0x164   : > { %v344_v13 = vpop.f32.mrb[0].mxu0 }
 0x165   : > { %v771_v15 = vadd.f32 %v344_v13, %v168_v11   ;;  %v663_v7 = vpop.f32.mrb[1].mxu0  ;;  %v1448_v11 = vmov %v1312_v58  ;;  %v1450_v13 = vmov %v1441_v56 }
 0x166   : > { %v1444_v7 = vmov %v440_v62 }
 0x167   : > { %v1446_v9 = vmov %v771_v15  ;;  %447 = vst [vmem:[#allocation11 + $0x20] sm:$0xff] (%p138_p4), %v771_v15 }
 0x168   :  { %951 = shalt.err (!%p948_p9)
}
 0x169   :  { %s952_s28 = scalar_lea.hbm %s1439_s7, 640 }
 0x16a   :  { %p953_p10 = scmp.ne.s32.totalorder %s1439_s7, %s952_s28  ;;  %p956_p11 = scmp.lt.u32.totalorder %s952_s28, %s1439_s7 }
 0x16c   :  { %p958_p12 = pnand %p956_p11, %p953_p10 }
 0x16e   :  { %961 = shalt.err (!%p958_p12)
}
 0x16f   :  { %473 = dma.vmem_to_hbm [thread:$0]  %s468_s24, 640, %s1439_s7, [#allocation12], %s1082_s17, %s1082_s17, %s1083_s18  }
 0x170   :  { %s962_s13 = scalar_lea.vmem %s1380_s26, 1024  ;;  %p967_p0 = scmp.lt.s32.totalorder %s1380_s26, %s1380_s26 }
 0x171   :  { %p963_p13 = scmp.ne.s32.totalorder %s1380_s26, %s962_s13  ;;  %p968_p1 = scmp.lt.s32.totalorder %s962_s13, %s962_s13 }
 0x173   :  { %p969_p2 = por %p968_p1, %p967_p0 }
 0x175   :  { %p970_p3 = pnand %p969_p2, %p963_p13 }
 0x177   :  { %973 = shalt.err (!%p970_p3)
}
 0x178   :  { %s974_s16 = scalar_lea.hbm %s1438_s6, 1024 }
 0x179   :  { %p975_p4 = scmp.ne.s32.totalorder %s1438_s6, %s974_s16  ;;  %p978_p5 = scmp.lt.u32.totalorder %s974_s16, %s1438_s6 }
 0x17b   :  { %p980_p6 = pnand %p978_p5, %p975_p4 }
 0x17d   :  { %983 = shalt.err (!%p980_p6)
}
 0x17e   :  { %461 = dma.vmem_to_hbm [thread:$0]  %s1380_s26, 1024, %s1438_s6, [#allocation4], %s1082_s17, %s1082_s17, %s1083_s18  }
 0x17f   :  { %s1093_s5 = smov [#allocation13]  }
 0x180   :  { %s479_s30 = sshll.u32 %s1093_s5, 4  ;;  %s480_s30 = int_to_ptr.vmem [resolvable:$true] %s479_s30 }
 0x181   :  { %s984_s22 = scalar_lea.vmem %s480_s30, 256  ;;  %p989_p8 = scmp.lt.s32.totalorder %s480_s30, %s480_s30 }
 0x182   :  { %p985_p7 = scmp.ne.s32.totalorder %s480_s30, %s984_s22  ;;  %p990_p9 = scmp.lt.s32.totalorder %s984_s22, %s984_s22 }
 0x184   :  { %p991_p10 = por %p990_p9, %p989_p8 }
 0x186   :  { %p992_p11 = pnand %p991_p10, %p985_p7 }
 0x188   :  { %995 = shalt.err (!%p992_p11)
}
 0x189   :  { %s996_s25 = scalar_lea.hbm %s1440_s8, 256 }
 0x18a   :  { %p997_p12 = scmp.ne.s32.totalorder %s1440_s8, %s996_s25  ;;  %p1000_p13 = scmp.lt.u32.totalorder %s996_s25, %s1440_s8 }
 0x18c   :  { %p1002_p0 = pnand %p1000_p13, %p997_p12 }
 0x18e   :  { %1005 = shalt.err (!%p1002_p0)
}
 0x18f   :  { %485 = dma.vmem_to_hbm [thread:$0]  %s480_s30, 256, %s1440_s8, [#allocation12], %s1082_s17, %s1082_s17, %s1083_s18  }
 0x190   :  { %1044 = dma.done.wait [#allocation4], 1024  }
 0x191   :  { %1045 = vsyncadd [#allocation4], 4294966272 }
 0x192   :  { %1046 = dma.done.wait [#allocation12], 896  }
 0x193   :  { %1047 = vsyncadd [#allocation12], 4294966400 }
 0x194   :  { %495 = vsyncpa [#allocation3], 1 }
 0x195   :  { %496 = vsyncpa [#allocation6], 1 }
 0x196   :  { %497 = vsyncpa [#allocation9], 1 }
 0x197   :  { %498 = vsyncpa [#allocation4], 1 }
 0x198   :  { %499 = vsyncpa [#allocation12], 1 }

</bundles_post_ra>
